<compile_context>
chip_gen: v7x
topology: tpu7x:2x2x1
jax: 0.10.0
libtpu: 0.0.40
codegen_flags: <defaults>
</compile_context>

<pallas_src>
import functools
import math

import jax
import jax.numpy as jnp
from jax.experimental import pallas as pl
from jax.experimental.pallas import tpu as pltpu

_LANES = 128
# 4096 rows * 128 lanes * 4 B = 2 MiB per f32 block; 2 x (in + out) buffers = 8 MiB,
# within default scoped VMEM on every TPU generation (16 MiB v5e, 32 MiB v6e/v7x).
_MAX_BLOCK_ROWS = 4096


def _softplus_kernel(x_ref, o_ref, *, beta: float, inv_beta: float, threshold: float):
    # Compute in f32 (keeps exp/log1p accuracy; mandatory on v5e, cheap elsewhere).
    xf = x_ref[...].astype(jnp.float32)
    bx = xf * beta if beta != 1.0 else xf        # static skip for the common beta=1
    # Numerically stable softplus; clamp before exp, revert to linear past threshold
    # (matches torch.nn.functional.softplus).
    sp = jnp.log1p(jnp.exp(jnp.minimum(bx, threshold)))
    if inv_beta != 1.0:                          # hoisted 1/beta as a static multiply
        sp = sp * inv_beta
    o_ref[...] = jnp.where(bx > threshold, xf, sp).astype(o_ref.dtype)


def softplus(x, beta: float = 1.0, threshold: float = 20.0):
    orig_shape = x.shape
    orig_dtype = x.dtype
    total = math.prod(orig_shape) if orig_shape else 1

    # Lane-dense flattening: (rows, 128). Every vreg lane is used; stores are full vst.
    rows = -(-total // _LANES)

    if rows <= _MAX_BLOCK_ROWS:
        if rows >= 16 and rows % 16 == 0:
            # >= 2 parallel grid steps so both TensorCores on v7x get work,
            # block_rows stays a multiple of 8 and divides rows (no padding).
            block_rows = rows // 2
        else:
            block_rows = rows  # single block == full array (no (8,128) constraint)
    else:
        block_rows = _MAX_BLOCK_ROWS

    padded_rows = -(-rows // block_rows) * block_rows
    padded_total = padded_rows * _LANES

    flat = x.reshape(-1)
    if padded_total != total:
        # Padded tail computes softplus(0) and is sliced off; only happens when the
        # flat size does not already divide the lane-dense block.
        flat = jnp.pad(flat, (0, padded_total - total))
    x2 = flat.reshape(padded_rows, _LANES)

    grid = (padded_rows // block_rows,)
    kernel = functools.partial(
        _softplus_kernel,
        beta=float(beta),
        inv_beta=1.0 / float(beta),
        threshold=float(threshold),
    )
    itemsize = jnp.dtype(orig_dtype).itemsize

    out2 = pl.pallas_call(
        kernel,
        out_shape=jax.ShapeDtypeStruct((padded_rows, _LANES), orig_dtype),
        grid_spec=pl.GridSpec(
            grid=grid,
            in_specs=[pl.BlockSpec((block_rows, _LANES), lambda i: (i, 0))],
            out_specs=pl.BlockSpec((block_rows, _LANES), lambda i: (i, 0)),
        ),
        compiler_params=pltpu.CompilerParams(
            dimension_semantics=("parallel",),
        ),
        cost_estimate=pl.CostEstimate(
            flops=5 * padded_total,            # mul, min, cmp, select, scale
            transcendentals=2 * padded_total,  # exp + log1p
            bytes_accessed=2 * padded_total * itemsize,
        ),
    )(x2)

    out_flat = out2.reshape(-1)
    if padded_total != total:
        out_flat = out_flat[:total]
    return out_flat.reshape(orig_shape)


if __name__ == "__main__":
    key = jax.random.PRNGKey(0)
    x = jax.random.normal(key, (2, 4, 16, 16), dtype=jnp.float32) * 10.0

    def ref_softplus(x, beta, threshold):
        bx = beta * x
        return jnp.where(
            bx > threshold, x, jnp.log1p(jnp.exp(jnp.minimum(bx, threshold))) / beta
        )

    # Default beta=1, threshold=20 (matches nn.Softplus() defaults).
    y = softplus(x, beta=1.0, threshold=20.0)
    jax.block_until_ready(y)
    assert y.shape == x.shape and y.dtype == x.dtype
    assert jnp.allclose(y, ref_softplus(x, 1.0, 20.0), atol=1e-5, rtol=1e-5)

    # Exercise the beta != 1 path (scaled + inv_beta multiply).
    y2 = softplus(x, beta=2.0, threshold=20.0)
    jax.block_until_ready(y2)
    assert jnp.allclose(y2, ref_softplus(x, 2.0, 20.0), atol=1e-5, rtol=1e-5)

    print("KERNEL_OK")
</pallas_src>

<mosaic_0001>
module attributes {stable_mosaic.version = 11 : i64} {
  func.func @_softplus_kernel(%arg0: i32, %arg1: memref<8x128xf32, #tpu.memory_space<vmem>>, %arg2: memref<8x128xf32, #tpu.memory_space<vmem>>) attributes {dimension_semantics = [#tpu.dimension_semantics<parallel>], iteration_bounds = array<i64: 2>, scalar_prefetch = 0 : i64, scratch_operands = 0 : i64, tpu.core_type = #tpu.core_type<tc>, window_params = [{transform_indices = @transform_0, window_bounds = array<i64: 8, 128>}, {transform_indices = @transform_1, window_bounds = array<i64: 8, 128>}]} {
    %c0 = arith.constant 0 : index
    %c0_0 = arith.constant 0 : index
    %0 = vector.load %arg1[%c0, %c0_0] : memref<8x128xf32, #tpu.memory_space<vmem>>, vector<8x128xf32>
    %cst = arith.constant 2.000000e+01 : f32
    %1 = vector.broadcast %cst : f32 to vector<8x128xf32>
    %2 = arith.minimumf %0, %1 : vector<8x128xf32>
    %3 = math.exp %2 : vector<8x128xf32>
    %4 = math.log1p %3 : vector<8x128xf32>
    %cst_1 = arith.constant 2.000000e+01 : f32
    %5 = vector.broadcast %cst_1 : f32 to vector<8x128xf32>
    %6 = arith.cmpf ogt, %0, %5 : vector<8x128xf32>
    %7 = arith.select %6, %0, %4 : vector<8x128xi1>, vector<8x128xf32>
    %c0_2 = arith.constant 0 : index
    %c0_3 = arith.constant 0 : index
    %8 = vector.load %arg2[%c0_2, %c0_3] : memref<8x128xf32, #tpu.memory_space<vmem>>, vector<8x128xf32>
    tpu.vector_store %arg2[%c0_2, %c0_3], %7 {strides = array<i32>} : memref<8x128xf32, #tpu.memory_space<vmem>>, vector<8x128xf32>,
    return
  }
  func.func @transform_0(%arg0: i32) -> (i32, i32) {
    %c0_i32 = arith.constant 0 : i32
    %c0_i32_0 = arith.constant 0 : i32
    return %arg0, %c0_i32 : i32, i32
  }
  func.func @transform_1(%arg0: i32) -> (i32, i32) {
    %c0_i32 = arith.constant 0 : i32
    %c0_i32_0 = arith.constant 0 : i32
    return %arg0, %c0_i32 : i32, i32
  }
}

</mosaic_0001>

<bundles_post_ra>
// kernel: tpu_custom_call.1
= control target key start
LH: loop header
LB: loop body
LE: loop exit
PB: predicated region body
PF: predicated region fallthrough
CT: control target
= control target key end

     0   :  { %6 = vsyncpa [#allocation3], 0  ;;  %s565_s0 = inlined_call_operand.hbm [shape: f32[16,128], index: 0, kind: input, shape index: {}]   ;;  %s566_s1 = inlined_call_operand.hbm [shape: f32[16,128], index: 1, kind: output, shape index: {}]  }
   0x1   :  { %8 = vsyncpa [#allocation3 + $0x1], 0 }
   0x2   :  { %9 = vsyncpa [#allocation4], 0 }
   0x3   :  { %11 = vsyncpa [#allocation4 + $0x1], 0  ;;  %s404_s6 = smov 0   ;;  %s406_s7 = smov 0  }
   0x4   :  { %s408_s8 = smov 0   ;;  %s410_s9 = smov 0  }
   0x5 LB: > { %s425_s10 = sadd.s32 4294967295, %s390_s9   ;;  %s232_s11 = sadd.s32 4294967294, %s390_s9   ;;  %s390_s9 = sphi %s410_s9, %s581_s9   ;;  %s386_s8 = sphi %s408_s8, %s580_s8   ;;  %s382_s7 = sphi %s406_s7, %s579_s7   ;;  %s378_s6 = sphi %s404_s6, %s578_s6  }
   0x6   : > { %s429_s12 = sadd.s32 1, %s390_s9   ;;  %s24_s13 = sadd.s32 1, %s386_s8 }
   0x7   : > { %s21_s14 = ssub.s32 %s390_s9, %s429_s12  ;;  %p31_p0 = scmp.ne.s32.totalorder %s386_s8, %s382_s7 }
   0x8   : > { %p22_p1 = scmp.eq.s32.totalorder %s21_s14, 0  ;;  %p32_p2 = scmp.eq.s32.totalorder %s390_s9, 0 }
   0x9   : > { %p37_p3 = scmp.ne.s32.totalorder %s382_s7, %s378_s6  ;;  %p38_p4 = scmp.eq.s32.totalorder %s425_s10, 0 }
   0xa   : > { %s441_s15 = scalar_select %p22_p1, %s386_s8, %s24_s13  }
   0xb   : > { %p443_p5 = por %p32_p2, %p31_p0  ;;  %p447_p6 = por %p38_p4, %p37_p3 }
   0xc   : > { %p61_p7 = scmp.eq.s32.totalorder %s425_s10, 1  ;;  %p67_p8 = scmp.eq.s32.totalorder %s232_s11, 1 }
   0xd   : > { %p256_p10 = scmp.lt.s32.totalorder %s390_s9, 2  ;;  %s87_s20 = sand.u32 1, %s386_s8  }
   0xe   : > { %p454_p11 = por %p61_p7, %p31_p0  ;;  %p458_p12 = por %p67_p8, %p37_p3 }
   0xf   : > { %s236_s21 = sshll.u32 %s390_s9, 7  ;;  %s235_s22 = sshll.u32 %s87_s20, 3 }
  0x10   : > { %s570_s18 = scalar_select %p454_p11, 1, 0 }
  0x11   : > { %s571_s19 = scalar_select %p458_p12, 1, 0 }
  0x12   : > { %s467_s25 = scalar_lea.hbm %s565_s0, %s236_s21  ;;  %s91_s26 = scalar_lea.vmem [#allocation2], %s235_s22 }
  0x13   : > { %s98_s27 = sshll.u32 %s91_s26, 4  ;;  %p471_p13 = pnand %p256_p10, %p443_p5  ;;  %s475_s27 = int_to_ptr.vmem [resolvable:$true] %s98_s27 }
  0x14   : > { %s88_s29 = scalar_lea.sflag [#allocation3], %s87_s20  ;;  %s294_s30 = scalar_lea.hbm %s467_s25, 128 }
  0x15   : > { %p295_p2 = scmp.ne.s32.totalorder %s467_s25, %s294_s30  ;;  %p296_p3 = pneg %p471_p13 }
  0x16   : > { %s299_s4 = scalar_lea.hbm %s565_s0, 256  ;;  %p300_p5 = scmp.lt.u32.totalorder %s467_s25, %s565_s0 }
  0x17   : > { %p297_p4 = pnand %p296_p3, %p295_p2  ;;  %p301_p8 = scmp.lt.u32.totalorder %s299_s4, %s294_s30 }
  0x18   : > { %p303_p9 = scmp.lt.u32.totalorder %s294_s30, %s467_s25 }
  0x19   : > { %p298_p7 = pneg %p297_p4  ;;  %p302_p10 = por %p301_p8, %p300_p5 }
  0x1b   : > { %p304_p0 = por %p303_p9, %p302_p10 }
  0x1d   : > { %p305_p1 = pnand %p304_p0, %p298_p7 }
  0x1f   : > { %308 = shalt.err (!%p305_p1)
}
  0x20   : > { %s309_s13 = scalar_lea.vmem %s475_s27, 128  ;;  %s392_s14 = smov [#allocation2]  }
  0x21   : > { %p310_p2 = scmp.ne.s32.totalorder %s475_s27, %s309_s13  ;;  %s314_s16 = sshll.u32 %s392_s14, 4  ;;  %s315_s16 = int_to_ptr.vmem [resolvable:$false] %s314_s16 }
  0x22   : > { %s316_s20 = scalar_lea.vmem %s315_s16, 256  ;;  %p317_p11 = scmp.lt.s32.totalorder %s475_s27, %s315_s16 }
  0x23   : > { %p312_p4 = pnand %p310_p2, %p296_p3  ;;  %p318_p5 = scmp.lt.s32.totalorder %s316_s20, %s309_s13 }
  0x25   : > { %p313_p12 = pneg %p312_p4  ;;  %p319_p8 = por %p318_p5, %p317_p11 }
  0x27   : > { %p320_p9 = pnand %p319_p8, %p313_p12 }
  0x29   : > { %323 = shalt.err (!%p320_p9)
}
  0x2a   : > { %251 = dma.hbm_to_vmem [thread:$0]  (!%p471_p13), %s467_s25, 128, %s475_s27, %s88_s29  }
  0x2b   : > { %p573_p0 = scmp.lt.s32.totalorder %s390_s9, 3  ;;  %p574_p1 = scmp.ge.s32.totalorder %s390_s9, 1 }
  0x2d   : > { %p104_p3 = pnand %p574_p1, %p573_p0 }
  0x2e   : > { %s509_s21 = sand.u32 (!%p104_p3), 1, %s382_s7  }
  0x2f   : > { %107 = sbr.rel (%p104_p3) target bundleno = 102 (0x66), region = 24  ;;  %s238_s22 = sshll.u32 (!%p104_p3), %s509_s21, 3 }
  0x30   : > { %s110_s23 = scalar_lea.sflag (!%p104_p3), [#allocation3], %s509_s21  ;;  %s113_s24 = scalar_lea.vmem (!%p104_p3), [#allocation2], %s238_s22 }
  0x36   : > { %369 = dma.done.wait (%p447_p6), %s110_s23, 128  }
  0x37   : > { %371 = vsyncadd (%p447_p6), %s110_s23, 4294967168  ;;  %v132_v0 = vld [vmem:[%s113_s24] sm:$0xff]  ;;  %s131_s25 = scalar_lea.vmem [#allocation5], %s238_s22  ;;  %s241_s17 = sshll.u32 %s425_s10, 7 }
  0x38   : > { %v133_v1 = vmin.f32 %v132_v0, 20.0  ;;  %s162_s26 = sshll.u32 %s131_s25, 4  ;;  %vm145_vm1 = vcmp.gt.f32.partialorder %v132_v0, 20.0  ;;  %s523_s29 = scalar_lea.hbm %s566_s1, %s241_s17  ;;  %s518_s26 = int_to_ptr.vmem [resolvable:$true] %s162_s26 }
  0x39   : > { %s149_s30 = scalar_lea.sflag [#allocation4], %s509_s21  ;;  %s324_s2 = scalar_lea.vmem %s518_s26, 128 }
  0x3a   : > { %v134_v2 = vmul.f32 1.442695, %v133_v1  ;;  %p325_p6 = scmp.ne.s32.totalorder %s518_s26, %s324_s2  ;;  %p575_p11 = scmp.ne.s32.totalorder %s570_s18, 0 }
  0x3b   : > { %s393_s10 = smov [#allocation5]  }
  0x3c   : > { %290 = vpow2.f32 %v134_v2  ;;  %p326_p12 = pnand %p325_p6, %p575_p11  ;;  %s328_s3 = sshll.u32 %s393_s10, 4  ;;  %s329_s3 = int_to_ptr.vmem [resolvable:$false] %s328_s3 }
  0x3d   : > { %s330_s4 = scalar_lea.vmem %s329_s3, 256  ;;  %p331_p7 = scmp.lt.s32.totalorder %s518_s26, %s329_s3 }
  0x3e   : > { %p327_p13 = pneg %p326_p12  ;;  %p332_p10 = scmp.lt.s32.totalorder %s330_s4, %s324_s2 }
  0x40   : > { %p333_p2 = por %p332_p10, %p331_p7 }
  0x42   : > { %p334_p4 = pnand %p333_p2, %p327_p13 }
  0x46   : > { %v291_v3 = vpop.eup %290 }
  0x47   : > { %v136_v4 = vadd.f32 1.0, %v291_v3  ;;  %v139_v5 = vmul.f32 -0.5, %v291_v3  ;;  %v142_v7 = vand.u32 2147483647, %v291_v3 }
  0x49   : > { %292 = vlog2.f32 %v136_v4  ;;  %v140_v6 = vadd.f32 1.0, %v139_v5  ;;  %vm143_vm0 = vcmp.lt.f32.partialorder %v142_v7, 0.0004427343 }
  0x4b   : > { %v141_v8 = vmul.f32 %v291_v3, %v140_v6 }
  0x53   : > { %v293_v9 = vpop.eup %292 }
  0x54   : > { %v138_v10 = vmul.f32 0.6931472, %v293_v9 }
  0x56   : > { %v144_v11 = vsel %vm143_vm0, %v141_v8, %v138_v10 }
  0x57   : > { %v146_v12 = vsel %vm145_vm1, %v132_v0, %v144_v11 }
  0x58   : > { %147 = vst [vmem:[%s131_s25] sm:$0xff] %v146_v12 }
  0x59   : > { %337 = shalt.err (!%p334_p4)
}
  0x5a   : > { %s338_s5 = scalar_lea.hbm %s523_s29, 128  ;;  %s342_s14 = scalar_lea.hbm %s566_s1, 256 }
  0x5b   : > { %p339_p5 = scmp.ne.s32.totalorder %s523_s29, %s338_s5  ;;  %p343_p0 = scmp.lt.u32.totalorder %s523_s29, %s566_s1 }
  0x5c   : > { %p344_p1 = scmp.lt.u32.totalorder %s342_s14, %s338_s5  ;;  %p346_p6 = scmp.lt.u32.totalorder %s338_s5, %s523_s29 }
  0x5d   : > { %p340_p8 = pnand %p339_p5, %p575_p11 }
  0x5e   : > { %p345_p3 = por %p344_p1, %p343_p0 }
  0x5f   : > { %p341_p9 = pneg %p340_p8 }
  0x60   : > { %p347_p12 = por %p346_p6, %p345_p3 }
  0x62   : > { %p348_p13 = pnand %p347_p12, %p341_p9 }
  0x64   : > { %351 = shalt.err (!%p348_p13)
}
  0x65   : > { %246 = dma.vmem_to_hbm [thread:$0]  (%p575_p11), %s518_s26, 128, %s523_s29, %s149_s30  }
  0x66 PF: > { %s174_s21 = sand.u32 1, %s378_s6   ;;  %p576_p7 = scmp.ne.s32.totalorder %s571_s19, 0 }
  0x67   : > { %p577_p10 = scmp.ge.s32.totalorder %s390_s9, 2  ;;  %s175_s22 = scalar_lea.sflag [#allocation4], %s174_s21 }
  0x69   : > { %p253_p2 = pnand %p577_p10, %p576_p7 }
  0x6b   : > { %373 = dma.done.wait (!%p253_p2), %s175_s22, 128  }
  0x6c   : > { %375 = vsyncadd (!%p253_p2), %s175_s22, 4294967168  ;;  %p14_p4 = scmp.ge.s32.totalorder %s429_s12, 4   ;;  %s578_s6 = smov %s382_s7 }
  0x6d   : > { %s579_s7 = smov %s386_s8  ;;  %s580_s8 = smov %s441_s15 }
  0x6e   : > { %s581_s9 = smov %s429_s12  ;;  %16 = sbr.rel (!%p14_p4) target bundleno = 5 (0x5), region = 69 }
  0x75   :  { %180 = vsyncpa [#allocation3], 1 }
  0x76   :  { %182 = vsyncpa [#allocation3 + $0x1], 1 }
  0x77   :  { %183 = vsyncpa [#allocation4], 1 }
  0x78   :  { %185 = vsyncpa [#allocation4 + $0x1], 1 }

</bundles_post_ra>
